<compile_context>
chip_gen: v5e
topology: v5e:2x2
jax: 0.10.0
libtpu: 0.0.40
codegen_flags: <defaults>
</compile_context>

<pallas_src>
import numpy as np
import jax
import jax.numpy as jnp
from jax.experimental import pallas as pl
from jax.experimental.pallas import tpu as pltpu


_LANE = 128
_TARGET_TILE_BYTES = 4 * 1024 * 1024       # ~4 MiB per pipelined buffer
_VMEM_LIMIT_FLOOR = 32 * 1024 * 1024       # never below the v6e/v7x scoped default
_VMEM_LIMIT_CEIL = 48 * 1024 * 1024        # safe under v7x's 64 MiB physical VMEM


def _build_pe(d_model: int, max_length: int) -> jnp.ndarray:
    """Sinusoidal positional-encoding buffer, shape (max_length, d_model), f32."""
    position = jnp.arange(0, max_length, dtype=jnp.float32)[:, None]          # (L, 1)
    div_term = jnp.exp(
        jnp.arange(0, d_model, 2, dtype=jnp.float32) * (-np.log(10000.0) / d_model)
    )                                                                          # (D/2,)
    angles = position * div_term                                               # (L, D/2)
    pe = jnp.zeros((max_length, d_model), dtype=jnp.float32)
    pe = pe.at[:, 0::2].set(jnp.sin(angles))
    pe = pe.at[:, 1::2].set(jnp.cos(angles))
    return pe


def _pe_add_2d_kernel(x_ref, pe_ref, o_ref):
    # x_ref / o_ref: (TS, D) — batch dim squeezed by the BlockSpec.
    # pe_ref:        (TS, D) — VMEM-resident across the inner batch loop.
    o_ref[...] = x_ref[...] + pe_ref[...]


def _pe_add_3d_kernel(x_ref, pe_ref, o_ref):
    # x_ref / o_ref: (TB, TS, D); pe_ref: (TS, D) broadcast over the batch block.
    o_ref[...] = x_ref[...] + pe_ref[...][None, :, :]


def _round_up(x: int, m: int) -> int:
    return ((x + m - 1) // m) * m


def _choose_tiling(B: int, S: int, D_pad: int, itemsize: int):
    """Pick (TB, TS, S_pad): batch block, sequence block, padded sequence length."""
    align = 8 * max(1, 4 // itemsize)            # sublane rows: 8 f32, 16 bf16, 32 i8
    S_al = _round_up(S, align)
    row_bytes = D_pad * itemsize

    # Sequence rows per tile targeting ~4 MiB per buffer (85%+ of HBM roofline).
    cap_rows = max(align, (_TARGET_TILE_BYTES // row_bytes) // align * align)
    num_s = pl.cdiv(S_al, cap_rows)

    # Keep >= 2 total grid steps when possible: enables DMA/compute overlap and
    # lets both v7x TensorCores take work even when S fits in a single tile.
    if num_s * B < 2 and S_al >= 2 * align:
        num_s = 2

    TS = _round_up(pl.cdiv(S_al, num_s), align)
    num_s = pl.cdiv(S_al, TS)
    S_pad = num_s * TS

    # Batch blocking: amortize the fixed per-grid-step overhead when a single
    # (TS, D) tile is far below the byte target (short sequences).
    TB = 1
    tile_bytes = TS * row_bytes
    if B > 1 and 2 * tile_bytes <= _TARGET_TILE_BYTES:
        max_tb = max(1, _TARGET_TILE_BYTES // tile_bytes)
        if num_s == 1:
            max_tb = min(max_tb, max(1, B // 2))   # keep the grid >= 2 steps
        max_tb = min(max_tb, B)
        TB = max(d for d in range(1, max_tb + 1) if B % d == 0)   # divisor of B
    return TB, TS, S_pad


def positional_encoding_forward(x: jnp.ndarray, pe: jnp.ndarray,
                                donate_x: bool = False) -> jnp.ndarray:
    """x: (B, S, D); pe: (max_length, D). Returns x + pe[:S] broadcast over B.

    donate_x=True adds input_output_aliases={0:0}; only use it at call sites
    that donate x (no bandwidth change, but avoids a second B*S*D HBM buffer).
    """
    B, S, D = x.shape
    max_length, d_model = pe.shape
    assert d_model == D, "pe feature dim must match x"
    assert S <= max_length, "sequence longer than max_length"

    itemsize = jnp.dtype(x.dtype).itemsize
    D_pad = _round_up(D, _LANE)                     # lane-dense last dim
    TB, TS, S_pad = _choose_tiling(B, S, D_pad, itemsize)
    num_s = S_pad // TS
    num_b = B // TB

    # Match dtypes once in the wrapper.  (PyTorch promotes to the wider dtype
    # during the add; for f32 inputs this is bit-identical, for bf16 the
    # rounding point differs by at most 1 ulp.)
    pe = pe.astype(x.dtype)

    needs_pad = (D_pad != D) or (S_pad != S)
    if needs_pad:
        # Pad once in the wrapper so the kernel always sees sublane-aligned rows
        # and a lane-dense (multiple-of-128) last dim; slice the output after.
        x_in = jnp.pad(x, ((0, 0), (0, S_pad - S), (0, D_pad - D)))
        pe_in = jnp.pad(pe[:S], ((0, S_pad - S), (0, D_pad - D)))
    else:
        x_in = x
        pe_in = pe                                  # full buffer; BlockSpec picks rows

    if TB == 1:
        # Squeezed batch dim -> clean 2-D vreg-for-vreg VPU add.
        kernel = _pe_add_2d_kernel
        x_spec = pl.BlockSpec((None, TS, D_pad), lambda s, b: (b, s, 0))
        o_spec = pl.BlockSpec((None, TS, D_pad), lambda s, b: (b, s, 0))
    else:
        # Batch-blocked tiles for short sequences; pe stays (TS, D) and resident.
        kernel = _pe_add_3d_kernel
        x_spec = pl.BlockSpec((TB, TS, D_pad), lambda s, b: (b, s, 0))
        o_spec = pl.BlockSpec((TB, TS, D_pad), lambda s, b: (b, s, 0))
    pe_spec = pl.BlockSpec((TS, D_pad), lambda s, b: (s, 0))   # b-independent -> resident

    # Pipeline footprint: x, out, pe each double-buffered.  Size the scoped-VMEM
    # limit explicitly (v5e default is only 16 MiB; v7x physical is 64 MiB).
    x_tile_bytes = TB * TS * D_pad * itemsize
    pe_tile_bytes = TS * D_pad * itemsize
    footprint = 2 * (2 * x_tile_bytes + pe_tile_bytes)
    vmem_limit = int(min(max(int(footprint * 1.5), _VMEM_LIMIT_FLOOR), _VMEM_LIMIT_CEIL))

    kwargs = {}
    if donate_x and not needs_pad:
        kwargs["input_output_aliases"] = {0: 0}     # x may be overwritten in place

    out = pl.pallas_call(
        kernel,
        out_shape=jax.ShapeDtypeStruct((B, S_pad, D_pad), x.dtype),
        grid_spec=pltpu.PrefetchScalarGridSpec(
            num_scalar_prefetch=0,
            grid=(num_s, num_b),        # batch innermost -> pe tile stays VMEM-resident
            in_specs=[x_spec, pe_spec],
            out_specs=o_spec,
        ),
        compiler_params=pltpu.CompilerParams(
            dimension_semantics=("parallel", "parallel"),
            vmem_limit_bytes=vmem_limit,
        ),
        **kwargs,
    )(x_in, pe_in)

    if needs_pad:
        out = out[:, :S, :D]
    return out


if __name__ == "__main__":
    key = jax.random.PRNGKey(0)

    def _check(B, S, D, max_length):
        pe = _build_pe(D, max_length)
        x = jax.random.normal(jax.random.fold_in(key, B * 100000 + S * 1000 + D),
                              (B, S, D), dtype=jnp.float32)
        out = jax.block_until_ready(positional_encoding_forward(x, pe))
        ref = x + pe[:S, :][None, :, :]
        np.testing.assert_allclose(np.asarray(out), np.asarray(ref),
                                   rtol=1e-6, atol=1e-6)

    # Aligned fast path: squeezed-batch 2-D kernel, pe full buffer indexed by rows.
    _check(B=2, S=16, D=128, max_length=64)
    # Batch-blocked + lane-padded path: D=96 -> padded to 128, TB=2 3-D broadcast kernel.
    _check(B=4, S=8, D=96, max_length=32)
    # Unaligned-S path: S=10 -> padded to 16 rows, output sliced back.
    _check(B=2, S=10, D=128, max_length=64)

    print("KERNEL_OK")
</pallas_src>

<mosaic_0001>
module attributes {stable_mosaic.version = 11 : i64} {
  func.func @_pe_add_2d_kernel(%arg0: i32, %arg1: i32, %arg2: memref<1x16x128xf32, #tpu.memory_space<vmem>>, %arg3: memref<16x128xf32, #tpu.memory_space<vmem>>, %arg4: memref<1x16x128xf32, #tpu.memory_space<vmem>>) attributes {dimension_semantics = [#tpu.dimension_semantics<parallel>, #tpu.dimension_semantics<parallel>], iteration_bounds = array<i64: 1, 2>, scalar_prefetch = 0 : i64, scratch_operands = 0 : i64, tpu.core_type = #tpu.core_type<tc>, window_params = [{transform_indices = @transform_0, window_bounds = array<i64: 1, 16, 128>}, {transform_indices = @transform_1, window_bounds = array<i64: 16, 128>}, {transform_indices = @transform_2, window_bounds = array<i64: 1, 16, 128>}]} {
    %c0 = arith.constant 0 : index
    %c0_0 = arith.constant 0 : index
    %c0_1 = arith.constant 0 : index
    %0 = vector.load %arg2[%c0, %c0_0, %c0_1] : memref<1x16x128xf32, #tpu.memory_space<vmem>>, vector<1x16x128xf32>
    %1 = vector.shape_cast %0 : vector<1x16x128xf32> to vector<16x128xf32>
    %c0_2 = arith.constant 0 : index
    %c0_3 = arith.constant 0 : index
    %2 = vector.load %arg3[%c0_2, %c0_3] : memref<16x128xf32, #tpu.memory_space<vmem>>, vector<16x128xf32>
    %3 = arith.addf %1, %2 : vector<16x128xf32>
    %c0_4 = arith.constant 0 : index
    %c0_5 = arith.constant 0 : index
    %c0_6 = arith.constant 0 : index
    %4 = vector.load %arg4[%c0_4, %c0_5, %c0_6] : memref<1x16x128xf32, #tpu.memory_space<vmem>>, vector<1x16x128xf32>
    %5 = vector.shape_cast %4 : vector<1x16x128xf32> to vector<16x128xf32>
    %6 = vector.shape_cast %3 : vector<16x128xf32> to vector<1x16x128xf32>
    tpu.vector_store %arg4[%c0_4, %c0_5, %c0_6], %6 {strides = array<i32>} : memref<1x16x128xf32, #tpu.memory_space<vmem>>, vector<1x16x128xf32>,
    return
  }
  func.func @transform_0(%arg0: i32, %arg1: i32) -> (i32, i32, i32) {
    %c0_i32 = arith.constant 0 : i32
    %c0_i32_0 = arith.constant 0 : i32
    return %arg1, %arg0, %c0_i32 : i32, i32, i32
  }
  func.func @transform_1(%arg0: i32, %arg1: i32) -> (i32, i32) {
    %c0_i32 = arith.constant 0 : i32
    %c0_i32_0 = arith.constant 0 : i32
    return %arg0, %c0_i32 : i32, i32
  }
  func.func @transform_2(%arg0: i32, %arg1: i32) -> (i32, i32, i32) {
    %c0_i32 = arith.constant 0 : i32
    %c0_i32_0 = arith.constant 0 : i32
    return %arg1, %arg0, %c0_i32 : i32, i32, i32
  }
}

</mosaic_0001>

<bundles_post_ra>
// kernel: tpu_custom_call.1
= control target key start
LH: loop header
LB: loop body
LE: loop exit
PB: predicated region body
PF: predicated region fallthrough
CT: control target
= control target key end

     0   :  { %7 = vsyncpa [#allocation3], 0  ;;  %s754_s0 = inlined_call_operand.hbm [shape: f32[2,16,128], index: 0, kind: input, shape index: {}]   ;;  %s755_s1 = inlined_call_operand.hbm [shape: f32[64,128], index: 1, kind: input, shape index: {}]   ;;  %s756_s2 = inlined_call_operand.hbm [shape: f32[2,16,128], index: 2, kind: output, shape index: {}]  }
   0x1   :  { %9 = vsyncpa [#allocation3 + $0x1], 0 }
   0x2   :  { %10 = vsyncpa [#allocation6], 0 }
   0x3   :  { %11 = vsyncpa [#allocation4], 0 }
   0x4   :  { %13 = vsyncpa [#allocation4 + $0x1], 0  ;;  %s599_s9 = smov 0   ;;  %s601_s10 = smov 0  }
   0x5   :  { %s603_s11 = smov 0   ;;  %s605_s12 = smov 0  }
   0x6   :  { %s607_s13 = smov 0   ;;  %s609_s14 = smov 0  }
   0x7 LB: > { %s335_s15 = sadd.s32 4294967295, %s577_s14   ;;  %s336_s16 = sadd.s32 4294967294, %s577_s14   ;;  %s577_s14 = sphi %s609_s14, %s19_s14   ;;  %s573_s13 = sphi %s607_s13, %s768_s13   ;;  %s569_s12 = sphi %s605_s12, %s767_s12   ;;  %s565_s11 = sphi %s603_s11, %s766_s11   ;;  %s561_s10 = sphi %s601_s10, %s765_s10   ;;  %s557_s9 = sphi %s599_s9, %s764_s9  }
   0x8   : > { %p53_p0 = scmp.ne.s32.totalorder %s561_s10, %s557_s9  ;;  %p633_p1 = scmp.eq.s32.totalorder %s335_s15, 0 }
   0x9   : > { %p637_p2 = scmp.eq.s32.totalorder %s335_s15, 1  ;;  %p111_p3 = scmp.eq.s32.totalorder %s336_s16, 1 }
   0xa   : > { %p643_p4 = por %p633_p1, %p53_p0  ;;  %p337_p5 = scmp.ge.s32.totalorder %s577_s14, 1 }
   0xb   : > { %p648_p6 = por %p111_p3, %p53_p0  ;;  %p118_p7 = scmp.lt.s32.totalorder %s577_s14, 3 }
   0xc   : > { %s132_s23 = sshll.u32 %s755_s1, 4  ;;  %s579_s25 = smov [#allocation5]   ;;  %s133_s23 = int_to_ptr.hbm [resolvable:$true] %s132_s23 }
   0xd   : > { %p656_p8 = pnand %p337_p5, %p118_p7  ;;  %s134_s26 = sshll.u32 %s579_s25, 4  ;;  %s135_s26 = int_to_ptr.vmem [resolvable:$true] %s134_s26 }
   0xe   : > { %p339_p11 = scmp.ge.s32.totalorder %s577_s14, 2  ;;  %s580_s27 = smov 128  }
   0xf   : > { %p362_p9 = pneg %p656_p8  ;;  %s581_s28 = smov 8  }
  0x10   : > { %s28_s29 = sadd.s32 1, %s573_s13  ;;  %s40_s30 = sadd.s32 1, %s565_s11 }
  0x11   : > { %p363_p10 = pnand %p362_p9, %p633_p1  ;;  %p29_p12 = scmp.ge.s32.totalorder %s28_s29, 2 }
  0x12   : > { %p47_p13 = scmp.ne.s32.totalorder %s565_s11, %s561_s10  ;;  %p48_p0 = scmp.eq.s32.totalorder %s577_s14, 0 }
  0x13   : > { %365 = dma.hbm_to_vmem [thread:$0]  (!%p363_p10), %s133_s23, 256, %s135_s26, [#allocation6], %s580_s27, %s580_s27, %s581_s28  }
  0x14   : > { %s770_s29 = smov (%p29_p12, %s28_s29), 0  ;;  %p675_p3 = por %p48_p0, %p47_p13 }
  0x15   : > { %p681_p5 = por %p637_p2, %p47_p13  ;;  %s35_s5 = ssub.s32 %s573_s13, %s770_s29 }
  0x16   : > { %p375_p7 = scmp.lt.s32.totalorder %s577_s14, 2  ;;  %p38_p9 = scmp.eq.s32.totalorder %s35_s5, 0 }
  0x17   : > { %s148_s6 = sand.u32 1, %s565_s11   ;;  %s352_s15 = sshll.u32 %s573_s13, 4 }
  0x18   : > { %s340_s7 = sshll.u32 %s148_s6, 4  ;;  %s159_s22 = scalar_lea.hbm %s754_s0, %s352_s15 }
  0x19   : > { %s690_s8 = scalar_select %p38_p9, %s565_s11, %s40_s30  }
  0x1a   : > { %s152_s23 = scalar_lea.vmem [#allocation2], %s340_s7  ;;  %s160_s18 = sshll.u32 %s159_s22, 4  ;;  %s161_s18 = int_to_ptr.hbm [resolvable:$true] %s160_s18 }
  0x1b   : > { %s162_s25 = sshll.u32 %s152_s23, 4  ;;  %p367_p2 = pnand %p375_p7, %p675_p3  ;;  %s163_s25 = int_to_ptr.vmem [resolvable:$true] %s162_s25 }
  0x1c   : > { %s149_s26 = scalar_lea.sflag [#allocation3], %s148_s6  ;;  %174 = sbr.rel (%p656_p8) target bundleno = 52 (0x34), region = 28 }
  0x1d   : > { %369 = dma.hbm_to_vmem [thread:$0]  (!%p367_p2), %s161_s18, 256, %s163_s25, %s149_s26, %s580_s27, %s580_s27, %s581_s28  }
  0x1e   : > { %s704_s30 = sand.u32 (!%p656_p8), 1, %s561_s10  }
  0x1f   : > { %s344_s5 = sshll.u32 (!%p656_p8), %s704_s30, 4  ;;  %s177_s7 = scalar_lea.sflag (!%p656_p8), [#allocation3], %s704_s30 }
  0x20   : > { %s180_s15 = scalar_lea.vmem (!%p656_p8), [#allocation2], %s344_s5 }
  0x21   : > { %544 = dma.done.wait (%p643_p4), %s177_s7, 256  }
  0x22   : > { %546 = vsyncadd (%p643_p4), %s177_s7, 4294967040 }
  0x23   : > { %548 = dma.done.wait (%p633_p1), [#allocation6], 256  }
  0x24   : > { %550 = vsyncadd (%p633_p1), [#allocation6], 4294967040  ;;  %s353_s24 = sshll.u32 %s569_s12, 4  ;;  %s206_s6 = scalar_lea.vmem [#allocation7], %s344_s5  ;;  %v210_v0 = vld [vmem:[%s180_s15] sm:$0xff]  ;;  %v211_v2 = vld [vmem:[%s180_s15 + $0x8] sm:$0xff] }
  0x25   : > { %s232_s3 = scalar_lea.hbm %s756_s2, %s353_s24  ;;  %s233_s16 = sshll.u32 %s206_s6, 4  ;;  %v212_v1 = vld [vmem:[#allocation5] sm:$0xff]  ;;  %v213_v4 = vld [vmem:[#allocation5 + $0x8] sm:$0xff]  ;;  %s234_s16 = int_to_ptr.vmem [resolvable:$true] %s233_s16 }
  0x26   : > { %s235_s21 = sshll.u32 %s232_s3, 4  ;;  %v214_v3 = vadd.f32 %v212_v1, %v210_v0  ;;  %v215_v5 = vadd.f32 %v213_v4, %v211_v2  ;;  %s219_s17 = scalar_lea.sflag [#allocation4], %s704_s30  ;;  %s236_s21 = int_to_ptr.hbm [resolvable:$true] %s235_s21 }
  0x27   : > { %s505_s12 = sshra.s32 %s236_s21, 4  ;;  %s511_s25 = scalar_lea.hbm %s756_s2, 32  ;;  %s506_s12 = int_to_ptr.hbm [resolvable:$true] %s505_s12 }
  0x28   : > { %216 = vst [vmem:[%s206_s6] sm:$0xff] %v214_v3  ;;  %s507_s19 = scalar_lea.hbm %s506_s12, 16  ;;  %p512_p10 = scmp.lt.s32.totalorder %s506_s12, %s756_s2 }
  0x29   : > { %217 = vst [vmem:[%s206_s6 + $0x8] sm:$0xff] %v215_v5  ;;  %p508_p1 = scmp.ne.s32.totalorder %s506_s12, %s507_s19  ;;  %p513_p12 = scmp.lt.s32.totalorder %s511_s25, %s507_s19 }
  0x2b   : > { %p509_p4 = pnand %p508_p1, %p681_p5  ;;  %p514_p13 = por %p513_p12, %p512_p10 }
  0x2d   : > { %p510_p8 = pneg %p509_p4 }
  0x2f   : > { %p515_p0 = pnand %p514_p13, %p510_p8 }
  0x31   : > { %518 = shalt.err (!%p515_p0)
}
  0x32   : > { %s582_s30 = smov 128   ;;  %s583_s5 = smov 8  }
  0x33   : > { %360 = dma.vmem_to_hbm [thread:$0]  (%p681_p5), %s234_s16, 256, %s236_s21, %s219_s17, %s582_s30, %s582_s30, %s583_s5  }
  0x34 PF: > { %s250_s7 = sand.u32 1, %s557_s9   ;;  %p371_p3 = pnand %p339_p11, %p648_p6 }
  0x35   : > { %s251_s15 = scalar_lea.sflag [#allocation4], %s250_s7 }
  0x36   : > { %p372_p7 = pneg %p371_p3 }
  0x38   : > { %552 = dma.done.wait (%p372_p7), %s251_s15, 256  }
  0x39   : > { %554 = vsyncadd (%p372_p7), %s251_s15, 4294967040  ;;  %s19_s14 = sadd.s32 1, %s577_s14   ;;  %s764_s9 = smov %s561_s10 }
  0x3a   : > { %p16_p9 = scmp.ge.s32.totalorder %s19_s14, 4   ;;  %s765_s10 = smov %s565_s11 }
  0x3b   : > { %s766_s11 = smov %s690_s8  ;;  %s767_s12 = smov %s573_s13 }
  0x3c   : > { %s768_s13 = smov %s770_s29  ;;  %18 = sbr.rel (!%p16_p9) target bundleno = 7 (0x7), region = 78 }
  0x41   :  { %257 = vsyncpa [#allocation3], 1 }
  0x42   :  { %259 = vsyncpa [#allocation3 + $0x1], 1 }
  0x43   :  { %260 = vsyncpa [#allocation6], 1 }
  0x44   :  { %261 = vsyncpa [#allocation4], 1 }
  0x45   :  { %263 = vsyncpa [#allocation4 + $0x1], 1 }

</bundles_post_ra>
